<compile_context>
chip_gen: v7x
topology: tpu7x:2x2x1
jax: 0.10.0
libtpu: 0.0.40
codegen_flags: <defaults>
</compile_context>

<pallas_src>
import functools

import jax
import jax.numpy as jnp
from jax import lax
from jax.experimental import pallas as pl
from jax.experimental.pallas import tpu as pltpu

TEMPERATURE = 0.07
INV_TEMPERATURE = 1.0 / TEMPERATURE
EPS = 1e-8
NORM_EPS = 1e-12  # F.normalize eps


def _combined_loss_kernel(
    logits_ref,       # (tile_m, C)  native dtype (e.g. f32 / bf16)
    featn_tile_ref,   # (tile_m, D)  bf16, pre-normalized rows (this tile)
    featn_full_ref,   # (B,      D)  bf16, pre-normalized rows (all rows, columns operand)
    labels_ref,       # (tile_m, 1)  int32
    labels_t_ref,     # (1,      B)  int32
    out_ref,          # (8,    128)  f32 per-tile partials
    *, batch, tile_m):
  step = pl.program_id(0)
  tm, C = logits_ref.shape
  B, D = featn_full_ref.shape

  # Row-validity mask for the (possibly padded) final tile.  Padded rows are only
  # ever combined row-wise, then blocked by the selects below, so no full-tile
  # sanitation of logits / features is needed (perf review item).
  row_ids = step * tile_m + lax.broadcasted_iota(jnp.int32, (tm, 1), 0)
  in_range = row_ids < batch                                    # (tm, 1) bool
  labels = jnp.where(in_range, labels_ref[...], 0)              # cheap (tm, 1) sanitize

  # ---------------- Cross entropy (partial sum over this tile) ----------------
  # TODO(synk): for vocab-scale C add an inner class-dim grid axis with online
  # logsumexp accumulators instead of keeping C as a single block.
  logits = logits_ref[...].astype(jnp.float32)                  # (tm, C)
  row_max = jnp.max(logits, axis=1, keepdims=True)
  lse = jnp.log(jnp.sum(jnp.exp(logits - row_max), axis=1, keepdims=True)) + row_max
  class_iota = lax.broadcasted_iota(jnp.int32, (tm, C), 1)
  picked = jnp.sum(jnp.where(class_iota == labels, logits, 0.0),
                   axis=1, keepdims=True)                       # single select pass
  ce_partial = jnp.sum(jnp.where(in_range, lse - picked, 0.0), keepdims=True)  # (1,1)

  # ---------------- Style contrast (partial sum over this tile) ---------------
  # Operands are already L2-normalized bf16 (wrapper); feed the MXU directly,
  # contracting on D of both operands (no transpose / relayout).
  # TODO(synk): for very large B, tile the similarity column dimension with
  # flash-style online-softmax accumulators instead of a resident (B, D) block.
  sim = lax.dot_general(featn_tile_ref[...], featn_full_ref[...],
                        dimension_numbers=(((1,), (1,)), ((), ())),
                        preferred_element_type=jnp.float32)     # (tm, B) f32

  same = labels == labels_t_ref[...]                            # (tm, B) bool
  g_rows = step * tile_m + lax.broadcasted_iota(jnp.int32, (tm, B), 0)
  cols = lax.broadcasted_iota(jnp.int32, (tm, B), 1)
  not_self = g_rows != cols                                     # bool (off-diagonal)

  sim_max = jnp.max(sim, axis=1, keepdims=True)
  # 1/T folded into the exp argument: exp((s - max(s)) / T) == softmax numerators of s/T.
  exp_sim = jnp.exp((sim - sim_max) * INV_TEMPERATURE)
  exp_nd = jnp.where(not_self, exp_sim, 0.0)                    # select, not convert+mul
  denom = jnp.sum(exp_nd, axis=1, keepdims=True)                # (tm, 1)
  numer = jnp.sum(jnp.where(same, exp_nd, 0.0), axis=1, keepdims=True)
  ratio = numer * pl.reciprocal(denom + EPS, approx=True)       # EUP, not VALU divide
  loss_vec = -jnp.log(ratio + EPS)                              # (tm, 1)

  # valid rows: at least one *other* sample with the same label, and in range.
  same_count = jnp.sum(same.astype(jnp.float32), axis=1, keepdims=True)  # single convert
  valid = jnp.logical_and(same_count > 1.5, in_range)
  style_partial = jnp.sum(jnp.where(valid, loss_vec, 0.0), keepdims=True)   # (1,1)
  cnt_partial = jnp.sum(jnp.where(valid, 1.0, 0.0), keepdims=True)          # (1,1)

  # ---------------- Per-tile partial output (row 0, lanes 0..2) ---------------
  subl = lax.broadcasted_iota(jnp.int32, (8, 128), 0)
  lane = lax.broadcasted_iota(jnp.int32, (8, 128), 1)
  row0 = subl == 0
  vals = jnp.where(jnp.logical_and(row0, lane == 0), ce_partial, 0.0)
  vals = jnp.where(jnp.logical_and(row0, lane == 1), style_partial, vals)
  vals = jnp.where(jnp.logical_and(row0, lane == 2), cnt_partial, vals)
  out_ref[...] = vals


def _pick_tile_m(B, C, D, logit_bytes):
  """Largest row tile whose estimated VMEM footprint fits the default scoped limit.

  The budget stays under the 32 MiB default scoped VMEM limit, which is safe on
  v7x (64 MiB physical) as well as v5e/v6e (128 MiB), so no per-generation
  vmem_limit_bytes override is needed.  tile_m=256 is allowed when it fits,
  which fills v6e's 256x256 MXU and halves grid-step overhead.
  """
  budget = 24 * 1024 * 1024
  for tm in (256, 128, 64, 32, 16, 8):
    if tm >= B:
      continue
    est = (2 * tm * C * logit_bytes      # double-buffered logits row tiles
           + 2 * tm * D * 2              # double-buffered bf16 feature row tiles
           + 2 * B * D * 2               # full bf16 feature block (invariant, dbl-buffered)
           + 2 * 4 * B                   # labels row (1, B) i32
           + 2 * 8 * 128 * 4             # output partial tiles
           + 4 * tm * C * 4              # live f32 CE temporaries
           + 5 * tm * B * 4)             # live f32 sim/exp/select temporaries
    if est <= budget:
      return tm
  return 8


def combined_loss(outputs, style_features, labels, *, tile_m=None):
  """outputs: (B, C) logits, style_features: (B, D), labels: (B,) int."""
  B, C = outputs.shape
  B2, D = style_features.shape
  assert B == B2

  if tile_m is None:
    tile_m = B if B <= 128 else _pick_tile_m(B, C, D, outputs.dtype.itemsize)
  if tile_m < B:
    tile_m = max(8, ((tile_m + 7) // 8) * 8)   # sublane-aligned row tiles
  tile_m = min(tile_m, B)
  num_tiles = pl.cdiv(B, tile_m)

  # Hoisted normalization (review item 1, option b): F.normalize in f32 once, then a
  # single bf16 copy feeds both the row tiles and the full column block of the MXU
  # (review item 2: bf16 operands, f32 accumulation).
  f32 = style_features.astype(jnp.float32)
  sumsq = jnp.sum(f32 * f32, axis=1, keepdims=True)
  feats_norm = (f32 * lax.rsqrt(jnp.maximum(sumsq, NORM_EPS * NORM_EPS))
                ).astype(jnp.bfloat16)

  # Labels in both layouts (free HLO reshapes) -> no in-kernel transpose.
  labels_col = labels.reshape(B, 1).astype(jnp.int32)
  labels_row = labels.reshape(1, B).astype(jnp.int32)

  kernel = functools.partial(_combined_loss_kernel, batch=B, tile_m=tile_m)

  # TODO(synk): pipeline_mode=pl.Buffered(1) on the two grid-invariant in_specs below
  # would halve their VMEM (their block index never changes); left at the default
  # double-buffering and accounted for in the _pick_tile_m budget instead.
  partials = pl.pallas_call(
      kernel,
      out_shape=jax.ShapeDtypeStruct((num_tiles * 8, 128), jnp.float32),
      grid_spec=pltpu.PrefetchScalarGridSpec(
          num_scalar_prefetch=0,
          grid=(num_tiles,),
          in_specs=[
              pl.BlockSpec((tile_m, C), lambda i: (i, 0)),   # logits row tile
              pl.BlockSpec((tile_m, D), lambda i: (i, 0)),   # normalized feature rows
              pl.BlockSpec((B, D), lambda i: (0, 0)),        # normalized features (columns)
              pl.BlockSpec((tile_m, 1), lambda i: (i, 0)),   # labels (column layout)
              pl.BlockSpec((1, B), lambda i: (0, 0)),        # labels (row layout)
          ],
          out_specs=pl.BlockSpec((8, 128), lambda i: (i, 0)),
      ),
      # Tiles are independent (per-tile partial outputs) -> fully parallel grid; on
      # v7x both TensorCores can process disjoint batch tiles.
      compiler_params=pltpu.CompilerParams(dimension_semantics=("parallel",)),
  )(outputs, feats_norm, feats_norm, labels_col, labels_row)

  # Tiny final combine in the wrapper (a handful of scalars).
  p = partials.reshape(num_tiles, 8, 128)
  ce_loss = jnp.sum(p[:, 0, 0]) * (1.0 / B)
  style_sum = jnp.sum(p[:, 0, 1])
  n_valid = jnp.sum(p[:, 0, 2])
  style_loss = jnp.where(n_valid > 0.0, style_sum / jnp.maximum(n_valid, 1.0), 0.0)
  return ce_loss + 0.1 * style_loss


def _reference(outputs, style_features, labels):
  # pure-JAX f32 reference mirroring the PyTorch semantics
  B, C = outputs.shape
  lse = jax.nn.logsumexp(outputs.astype(jnp.float32), axis=1)
  picked = outputs.astype(jnp.float32)[jnp.arange(B), labels]
  ce = jnp.mean(lse - picked)

  f32 = style_features.astype(jnp.float32)
  f = f32 / jnp.maximum(jnp.linalg.norm(f32, axis=1, keepdims=True), NORM_EPS)
  sim = f @ f.T / TEMPERATURE
  same = (labels[None, :] == labels[:, None]).astype(jnp.float32)
  eye = jnp.eye(B, dtype=jnp.float32)
  masks = same - eye
  exp_sim = jnp.exp(sim - jnp.max(sim, axis=1, keepdims=True))
  denom = jnp.sum(exp_sim * (1.0 - eye), axis=1)
  numer = jnp.sum(exp_sim * masks, axis=1)
  loss_vec = -jnp.log(numer / (denom + EPS) + EPS)
  valid = jnp.sum(masks, axis=1) > 0
  nv = jnp.sum(valid)
  style = jnp.where(nv > 0,
                    jnp.sum(jnp.where(valid, loss_vec, 0.0)) / jnp.maximum(nv, 1),
                    0.0)
  return ce + 0.1 * style


if __name__ == "__main__":
  key = jax.random.PRNGKey(0)
  k1, k2, k3 = jax.random.split(key, 3)

  # Small shapes consistent with the module: batch=8, classes=16, feat dim=32.
  B, C, D = 8, 16, 32
  outputs = jax.random.normal(k1, (B, C), dtype=jnp.float32)
  style_features = jax.random.normal(k2, (B, D), dtype=jnp.float32)
  labels = jax.random.randint(k3, (B,), 0, 4, dtype=jnp.int32)

  loss = combined_loss(outputs, style_features, labels)
  jax.block_until_ready(loss)
  ref = _reference(outputs, style_features, labels)
  # Tolerance accounts for bf16 MXU operands in the style term (per perf review)
  # plus the approx EUP reciprocal; the f32 reference is exact.
  assert jnp.allclose(loss, ref, rtol=1e-2, atol=1e-2), (loss, ref)

  # Exercise the tiled, parallel-grid path (3 batch tiles incl. a padded final tile).
  B2 = 20
  outputs2 = jax.random.normal(k1, (B2, C), dtype=jnp.float32)
  features2 = jax.random.normal(k2, (B2, D), dtype=jnp.float32)
  labels2 = jax.random.randint(k3, (B2,), 0, 4, dtype=jnp.int32)
  loss2 = combined_loss(outputs2, features2, labels2, tile_m=8)
  jax.block_until_ready(loss2)
  ref2 = _reference(outputs2, features2, labels2)
  assert jnp.allclose(loss2, ref2, rtol=1e-2, atol=1e-2), (loss2, ref2)

  print("KERNEL_OK")
</pallas_src>

<mosaic_0001>
module attributes {stable_mosaic.version = 11 : i64} {
  func.func @_combined_loss_kernel(%arg0: i32, %arg1: memref<8x16xf32, #tpu.memory_space<vmem>>, %arg2: memref<8x32xbf16, #tpu.memory_space<vmem>>, %arg3: memref<8x32xbf16, #tpu.memory_space<vmem>>, %arg4: memref<8x1xi32, #tpu.memory_space<vmem>>, %arg5: memref<1x8xi32, #tpu.memory_space<vmem>>, %arg6: memref<8x128xf32, #tpu.memory_space<vmem>>) attributes {dimension_semantics = [#tpu.dimension_semantics<parallel>], iteration_bounds = array<i64: 1>, scalar_prefetch = 0 : i64, scratch_operands = 0 : i64, tpu.core_type = #tpu.core_type<tc>, window_params = [{transform_indices = @transform_0, window_bounds = array<i64: 8, 16>}, {transform_indices = @transform_1, window_bounds = array<i64: 8, 32>}, {pipeline_mode = #tpu.pipeline_mode<synchronous>, transform_indices = @transform_2, window_bounds = array<i64: 8, 32>}, {transform_indices = @transform_3, window_bounds = array<i64: 8, 1>}, {pipeline_mode = #tpu.pipeline_mode<synchronous>, transform_indices = @transform_4, window_bounds = array<i64: 1, 8>}, {transform_indices = @transform_5, window_bounds = array<i64: 8, 128>}]} {
    %c8_i32 = arith.constant 8 : i32
    %0 = arith.muli %arg0, %c8_i32 : i32
    %1 = tpu.iota {dimensions = array<i32: 0>} : vector<8x1xi32>
    %2 = vector.broadcast %0 : i32 to vector<8x1xi32>
    %3 = arith.addi %2, %1 : vector<8x1xi32>
    %c8_i32_0 = arith.constant 8 : i32
    %4 = vector.broadcast %c8_i32_0 : i32 to vector<8x1xi32>
    %5 = arith.cmpi slt, %3, %4 : vector<8x1xi32>
    %c0 = arith.constant 0 : index
    %c0_1 = arith.constant 0 : index
    %6 = vector.load %arg4[%c0, %c0_1] : memref<8x1xi32, #tpu.memory_space<vmem>>, vector<8x1xi32>
    %c0_i32 = arith.constant 0 : i32
    %7 = vector.broadcast %c0_i32 : i32 to vector<8x1xi32>
    %8 = arith.select %5, %6, %7 : vector<8x1xi1>, vector<8x1xi32>
    %c0_2 = arith.constant 0 : index
    %c0_3 = arith.constant 0 : index
    %9 = vector.load %arg1[%c0_2, %c0_3] : memref<8x16xf32, #tpu.memory_space<vmem>>, vector<8x16xf32>
    %cst = arith.constant dense<0xFF800000> : vector<8xf32>
    %10 = vector.multi_reduction <maximumf>, %9, %cst [1] : vector<8x16xf32> to vector<8xf32>
    %11 = vector.shape_cast %10 : vector<8xf32> to vector<8x1xf32>
    %12 = vector.broadcast %11 : vector<8x1xf32> to vector<8x16xf32>
    %13 = arith.subf %9, %12 : vector<8x16xf32>
    %14 = math.exp %13 : vector<8x16xf32>
    %cst_4 = arith.constant dense<0.000000e+00> : vector<8xf32>
    %15 = vector.multi_reduction <add>, %14, %cst_4 [1] : vector<8x16xf32> to vector<8xf32>
    %16 = vector.shape_cast %15 : vector<8xf32> to vector<8x1xf32>
    %17 = math.log %16 : vector<8x1xf32>
    %18 = arith.addf %17, %11 : vector<8x1xf32>
    %19 = tpu.iota {dimensions = array<i32: 1>} : vector<8x16xi32>
    %20 = vector.broadcast %8 : vector<8x1xi32> to vector<8x16xi32>
    %21 = arith.cmpi eq, %19, %20 : vector<8x16xi32>
    %cst_5 = arith.constant 0.000000e+00 : f32
    %22 = vector.broadcast %cst_5 : f32 to vector<8x16xf32>
    %23 = arith.select %21, %9, %22 : vector<8x16xi1>, vector<8x16xf32>
    %cst_6 = arith.constant dense<0.000000e+00> : vector<8xf32>
    %24 = vector.multi_reduction <add>, %23, %cst_6 [1] : vector<8x16xf32> to vector<8xf32>
    %25 = vector.shape_cast %24 : vector<8xf32> to vector<8x1xf32>
    %26 = arith.subf %18, %25 : vector<8x1xf32>
    %cst_7 = arith.constant 0.000000e+00 : f32
    %27 = vector.broadcast %cst_7 : f32 to vector<8x1xf32>
    %28 = arith.select %5, %26, %27 : vector<8x1xi1>, vector<8x1xf32>
    %29 = vector.shape_cast %28 : vector<8x1xf32> to vector<1x8x1xf32>
    %cst_8 = arith.constant dense<0.000000e+00> : vector<1xf32>
    %30 = vector.multi_reduction <add>, %29, %cst_8 [1, 2] : vector<1x8x1xf32> to vector<1xf32>
    %31 = vector.shape_cast %30 : vector<1xf32> to vector<1x1x1xf32>
    %32 = vector.extract %31[0, 0, 0] : f32 from vector<1x1x1xf32>
    %33 = vector.broadcast %32 : f32 to vector<1x1xf32>
    %c0_9 = arith.constant 0 : index
    %c0_10 = arith.constant 0 : index
    %34 = vector.load %arg2[%c0_9, %c0_10] : memref<8x32xbf16, #tpu.memory_space<vmem>>, vector<8x32xbf16>
    %c0_11 = arith.constant 0 : index
    %c0_12 = arith.constant 0 : index
    %35 = vector.load %arg3[%c0_11, %c0_12] : memref<8x32xbf16, #tpu.memory_space<vmem>>, vector<8x32xbf16>
    %cst_13 = arith.constant dense<0.000000e+00> : vector<8x8xf32>
    %36 = tpu.matmul %34, %35, %cst_13 {dimension_numbers = #tpu.dot_dimension_numbers<[1], [1], [0], [0], [0, 0, 1, 0], [], []>} : vector<8x32xbf16>, vector<8x32xbf16>, vector<8x8xf32> -> vector<8x8xf32>
    %c0_14 = arith.constant 0 : index
    %c0_15 = arith.constant 0 : index
    %37 = vector.load %arg5[%c0_14, %c0_15] : memref<1x8xi32, #tpu.memory_space<vmem>>, vector<1x8xi32>
    %38 = vector.broadcast %8 : vector<8x1xi32> to vector<8x8xi32>
    %39 = vector.broadcast %37 : vector<1x8xi32> to vector<8x8xi32>
    %40 = arith.cmpi eq, %38, %39 : vector<8x8xi32>
    %c8_i32_16 = arith.constant 8 : i32
    %41 = arith.muli %arg0, %c8_i32_16 : i32
    %42 = tpu.iota {dimensions = array<i32: 0>} : vector<8x8xi32>
    %43 = vector.broadcast %41 : i32 to vector<8x8xi32>
    %44 = arith.addi %43, %42 : vector<8x8xi32>
    %45 = tpu.iota {dimensions = array<i32: 1>} : vector<8x8xi32>
    %46 = arith.cmpi ne, %44, %45 : vector<8x8xi32>
    %cst_17 = arith.constant dense<0xFF800000> : vector<8xf32>
    %47 = vector.multi_reduction <maximumf>, %36, %cst_17 [1] : vector<8x8xf32> to vector<8xf32>
    %48 = vector.shape_cast %47 : vector<8xf32> to vector<8x1xf32>
    %49 = vector.broadcast %48 : vector<8x1xf32> to vector<8x8xf32>
    %50 = arith.subf %36, %49 : vector<8x8xf32>
    %cst_18 = arith.constant 14.2857141 : f32
    %51 = vector.broadcast %cst_18 : f32 to vector<8x8xf32>
    %52 = arith.mulf %50, %51 : vector<8x8xf32>
    %53 = math.exp %52 : vector<8x8xf32>
    %cst_19 = arith.constant 0.000000e+00 : f32
    %54 = vector.broadcast %cst_19 : f32 to vector<8x8xf32>
    %55 = arith.select %46, %53, %54 : vector<8x8xi1>, vector<8x8xf32>
    %cst_20 = arith.constant dense<0.000000e+00> : vector<8xf32>
    %56 = vector.multi_reduction <add>, %55, %cst_20 [1] : vector<8x8xf32> to vector<8xf32>
    %57 = vector.shape_cast %56 : vector<8xf32> to vector<8x1xf32>
    %cst_21 = arith.constant 0.000000e+00 : f32
    %58 = vector.broadcast %cst_21 : f32 to vector<8x8xf32>
    %59 = arith.select %40, %55, %58 : vector<8x8xi1>, vector<8x8xf32>
    %cst_22 = arith.constant dense<0.000000e+00> : vector<8xf32>
    %60 = vector.multi_reduction <add>, %59, %cst_22 [1] : vector<8x8xf32> to vector<8xf32>
    %61 = vector.shape_cast %60 : vector<8xf32> to vector<8x1xf32>
    %cst_23 = arith.constant 9.99999993E-9 : f32
    %62 = vector.broadcast %cst_23 : f32 to vector<8x1xf32>
    %63 = arith.addf %57, %62 : vector<8x1xf32>
    %64 = tpu.reciprocal %63 {approx = true} : vector<8x1xf32> -> vector<8x1xf32>
    %65 = arith.mulf %61, %64 : vector<8x1xf32>
    %cst_24 = arith.constant 9.99999993E-9 : f32
    %66 = vector.broadcast %cst_24 : f32 to vector<8x1xf32>
    %67 = arith.addf %65, %66 : vector<8x1xf32>
    %68 = math.log %67 : vector<8x1xf32>
    %cst_25 = arith.constant 0.000000e+00 : f32
    %69 = vector.broadcast %cst_25 : f32 to vector<8x1xf32>
    %70 = arith.subf %69, %68 : vector<8x1xf32>
    %71 = arith.extui %40 : vector<8x8xi1> to vector<8x8xi32>
    %72 = arith.sitofp %71 : vector<8x8xi32> to vector<8x8xf32>
    %cst_26 = arith.constant dense<0.000000e+00> : vector<8xf32>
    %73 = vector.multi_reduction <add>, %72, %cst_26 [1] : vector<8x8xf32> to vector<8xf32>
    %74 = vector.shape_cast %73 : vector<8xf32> to vector<8x1xf32>
    %cst_27 = arith.constant 1.500000e+00 : f32
    %75 = vector.broadcast %cst_27 : f32 to vector<8x1xf32>
    %76 = arith.cmpf ogt, %74, %75 : vector<8x1xf32>
    %77 = arith.andi %76, %5 : vector<8x1xi1>
    %cst_28 = arith.constant 0.000000e+00 : f32
    %78 = vector.broadcast %cst_28 : f32 to vector<8x1xf32>
    %79 = arith.select %77, %70, %78 : vector<8x1xi1>, vector<8x1xf32>
    %80 = vector.shape_cast %79 : vector<8x1xf32> to vector<1x8x1xf32>
    %cst_29 = arith.constant dense<0.000000e+00> : vector<1xf32>
    %81 = vector.multi_reduction <add>, %80, %cst_29 [1, 2] : vector<1x8x1xf32> to vector<1xf32>
    %82 = vector.shape_cast %81 : vector<1xf32> to vector<1x1x1xf32>
    %83 = vector.extract %82[0, 0, 0] : f32 from vector<1x1x1xf32>
    %84 = vector.broadcast %83 : f32 to vector<1x1xf32>
    %cst_30 = arith.constant 1.000000e+00 : f32
    %cst_31 = arith.constant 0.000000e+00 : f32
    %85 = vector.broadcast %cst_30 : f32 to vector<8x1xf32>
    %86 = vector.broadcast %cst_31 : f32 to vector<8x1xf32>
    %87 = arith.select %77, %85, %86 : vector<8x1xi1>, vector<8x1xf32>
    %88 = vector.shape_cast %87 : vector<8x1xf32> to vector<1x8x1xf32>
    %cst_32 = arith.constant dense<0.000000e+00> : vector<1xf32>
    %89 = vector.multi_reduction <add>, %88, %cst_32 [1, 2] : vector<1x8x1xf32> to vector<1xf32>
    %90 = vector.shape_cast %89 : vector<1xf32> to vector<1x1x1xf32>
    %91 = vector.extract %90[0, 0, 0] : f32 from vector<1x1x1xf32>
    %92 = vector.broadcast %91 : f32 to vector<1x1xf32>
    %93 = tpu.iota {dimensions = array<i32: 0>} : vector<8x128xi32>
    %94 = tpu.iota {dimensions = array<i32: 1>} : vector<8x128xi32>
    %c0_i32_33 = arith.constant 0 : i32
    %95 = vector.broadcast %c0_i32_33 : i32 to vector<8x128xi32>
    %96 = arith.cmpi eq, %93, %95 : vector<8x128xi32>
    %c0_i32_34 = arith.constant 0 : i32
    %97 = vector.broadcast %c0_i32_34 : i32 to vector<8x128xi32>
    %98 = arith.cmpi eq, %94, %97 : vector<8x128xi32>
    %99 = arith.andi %96, %98 : vector<8x128xi1>
    %cst_35 = arith.constant 0.000000e+00 : f32
    %100 = vector.shape_cast %33 : vector<1x1xf32> to vector<1x1xf32>
    %101 = vector.broadcast %100 : vector<1x1xf32> to vector<8x128xf32>
    %102 = vector.broadcast %cst_35 : f32 to vector<8x128xf32>
    %103 = arith.select %99, %101, %102 : vector<8x128xi1>, vector<8x128xf32>
    %c1_i32 = arith.constant 1 : i32
    %104 = vector.broadcast %c1_i32 : i32 to vector<8x128xi32>
    %105 = arith.cmpi eq, %94, %104 : vector<8x128xi32>
    %106 = arith.andi %96, %105 : vector<8x128xi1>
    %107 = vector.shape_cast %84 : vector<1x1xf32> to vector<1x1xf32>
    %108 = vector.broadcast %107 : vector<1x1xf32> to vector<8x128xf32>
    %109 = arith.select %106, %108, %103 : vector<8x128xi1>, vector<8x128xf32>
    %c2_i32 = arith.constant 2 : i32
    %110 = vector.broadcast %c2_i32 : i32 to vector<8x128xi32>
    %111 = arith.cmpi eq, %94, %110 : vector<8x128xi32>
    %112 = arith.andi %96, %111 : vector<8x128xi1>
    %113 = vector.shape_cast %92 : vector<1x1xf32> to vector<1x1xf32>
    %114 = vector.broadcast %113 : vector<1x1xf32> to vector<8x128xf32>
    %115 = arith.select %112, %114, %109 : vector<8x128xi1>, vector<8x128xf32>
    %c0_36 = arith.constant 0 : index
    %c0_37 = arith.constant 0 : index
    %116 = vector.load %arg6[%c0_36, %c0_37] : memref<8x128xf32, #tpu.memory_space<vmem>>, vector<8x128xf32>
    tpu.vector_store %arg6[%c0_36, %c0_37], %115 {strides = array<i32>} : memref<8x128xf32, #tpu.memory_space<vmem>>, vector<8x128xf32>,
    return
  }
  func.func @transform_0(%arg0: i32) -> (i32, i32) {
    %c0_i32 = arith.constant 0 : i32
    %c0_i32_0 = arith.constant 0 : i32
    return %arg0, %c0_i32 : i32, i32
  }
  func.func @transform_1(%arg0: i32) -> (i32, i32) {
    %c0_i32 = arith.constant 0 : i32
    %c0_i32_0 = arith.constant 0 : i32
    return %arg0, %c0_i32 : i32, i32
  }
  func.func @transform_2(%arg0: i32) -> (i32, i32) {
    %c0_i32 = arith.constant 0 : i32
    %c0_i32_0 = arith.constant 0 : i32
    %c0_i32_1 = arith.constant 0 : i32
    return %c0_i32, %c0_i32_0 : i32, i32
  }
  func.func @transform_3(%arg0: i32) -> (i32, i32) {
    %c0_i32 = arith.constant 0 : i32
    %c0_i32_0 = arith.constant 0 : i32
    return %arg0, %c0_i32 : i32, i32
  }
  func.func @transform_4(%arg0: i32) -> (i32, i32) {
    %c0_i32 = arith.constant 0 : i32
    %c0_i32_0 = arith.constant 0 : i32
    %c0_i32_1 = arith.constant 0 : i32
    return %c0_i32, %c0_i32_0 : i32, i32
  }
  func.func @transform_5(%arg0: i32) -> (i32, i32) {
    %c0_i32 = arith.constant 0 : i32
    %c0_i32_0 = arith.constant 0 : i32
    return %arg0, %c0_i32 : i32, i32
  }
}

</mosaic_0001>

<bundles_post_ra>
// kernel: tpu_custom_call.1
= control target key start
LH: loop header
LB: loop body
LE: loop exit
PB: predicated region body
PF: predicated region fallthrough
CT: control target
= control target key end

     0   :  { %vm69_vm0 = vcmask 261120   ;;  %v260_v1 = vmov 0.0   ;;  %vm261_vm1 = vmmov 0   ;;  %s343_s0 = inlined_call_operand.vmem [shape: f32[8,16], index: 0, kind: input, shape index: {}]   ;;  %s344_s1 = inlined_call_operand.vmem [shape: bf16[8,32], index: 1, kind: input, shape index: {}]   ;;  %s345_s2 = inlined_call_operand.vmem [shape: bf16[8,32], index: 2, kind: input, shape index: {}]   ;;  %s346_s3 = inlined_call_operand.vmem [shape: s32[8,1], index: 3, kind: input, shape index: {}]   ;;  %s347_s4 = inlined_call_operand.vmem [shape: s32[1,8], index: 4, kind: input, shape index: {}]   ;;  %s348_s5 = inlined_call_operand.hbm [shape: f32[8,128], index: 5, kind: output, shape index: {}]  }
   0x1   :  { %v68_v0 = vld [vmem:[%s345_s2] sm:$0xf]  ;;  %208 = vmatprep.subr.bf16.mxu0 %v260_v1  ;;  %210 = vmatprep.mubr.msk.bf16.mxu0 %vm261_vm1, %v260_v1 }
   0x2   :  { %v74_v2 = vsel %vm69_vm0, %v68_v0, 0 }
   0x3   :  { %10 = vsyncpa [#allocation3], 0  ;;  %209 = vmatpush3.bf16.xpose.msra.mxu0 %v74_v2  ;;  %v67_v3 = vld [vmem:[%s344_s1] sm:$0xf]  ;;  %v262_v5 = vmov 0   ;;  %vm123_vm2 = vcmask 64512   ;;  %v23_v20 = vlaneseq }
   0x4   :  { %v28_v4 = vld [vmem:[%s346_s3] sm:$0xff]  ;;  %224 = vset.pattern.permute.xlu1 %v262_v5  ;;  %225 = vset.pattern.permute.xlu0 %v262_v5  ;;  %vm31_vm3 = vcmask 130048   ;;  %vm56_vm7 = vcmask 7168   ;;  %s263_s25 = smov [#allocation2]  }
   0x5   :  { %47 = vperm.xlu1 %224, %v28_v4   ;;  %v30_v7 = vld [vmem:[%s343_s0] sm:$0xff]  ;;  %v310_v21 = vand.u32 127, %v23_v20  ;;  %v312_v22 = vshrl.u32 %v23_v20, 7  ;;  %s195_s26 = sshll.u32 %s263_s25, 4  ;;  %s196_s26 = int_to_ptr.vmem [resolvable:$true] %s195_s26 }
   0x6   :  { %v32_v12 = vsel %vm31_vm3, %v30_v7, -inf  ;;  %v204_v23 = vld [vmem:[%s347_s4] ss:$0 sm:$0xff]  ;;  %s236_s28 = scalar_lea.vmem %s196_s26, 128  ;;  %p241_p1 = scmp.lt.s32.totalorder %s196_s26, %s196_s26 }
   0x7   :  { %vm122_vm4 = vcmp.ne.s32.totalorder %v312_v22, %v310_v21  ;;  %vm175_vm9 = vcmp.eq.s32.totalorder %v312_v22, 0  ;;  %vm176_vm10 = vcmp.eq.s32.totalorder %v310_v21, 0  ;;  %vm180_vm11 = vcmp.eq.s32.totalorder %v310_v21, 1  ;;  %p237_p0 = scmp.ne.s32.totalorder %s196_s26, %s236_s28  ;;  %p242_p2 = scmp.lt.s32.totalorder %s236_s28, %s236_s28 }
   0x8   :  { %vm184_vm12 = vcmp.eq.s32.totalorder %v310_v21, 2  ;;  %vm177_vm13 = vmand %vm175_vm9, %vm176_vm10 }
   0x9   :  { %vm181_vm14 = vmand %vm175_vm9, %vm180_vm11  ;;  %p243_p3 = por %p242_p2, %p241_p1 }
   0xa   :  { %211 = vmatmul.mubr.msk.bf16.vlgmr.msra.gmra.mrb[0].mxu0 %vm69_vm0, %v67_v3  ;;  %vm185_vm15 = vmand %vm175_vm9, %vm184_vm12 }
   0xb   :  { %p244_p4 = pnand %p243_p3, %p237_p0 }
  0x84   :  { %v48_v24 = vpop.permute.xlu1 %47 }
  0x85   :  { %vm121_vm5 = vcmp.eq.s32.totalorder %v48_v24, %v204_v23  ;;  %vm49_vm6 = vcmp.eq.s32.totalorder %v310_v21, %v48_v24 }
  0x86   :  { %v50_v32 = vsel %vm49_vm6, %v30_v7, 0.0  ;;  %v205_v34 = vsel %vm121_vm5, 1.0, %v260_v1 }
  0x87   :  { %v51_v33 = vsel %vm31_vm3, %v50_v32, 0.0  ;;  %v148_v35 = vsel %vm123_vm2, %v205_v34, 0.0 }
  0xdd   :  { %v110_v6 = vpop.f32.mrb[0].mxu0 }
  0xde   :  { %v212_v8 = vpop.f32.mrb[1].mxu0  ;;  %v124_v9 = vsel %vm123_vm2, %v110_v6, -inf }
  0xdf   :  { %125 = vmax.xlane.f32.xlu0 %v124_v9  ;;  %v113_v10 = vpop.f32.mrb[2].mxu0 }
  0xe0   :  { %v213_v11 = vpop.f32.mrb[3].mxu0 }
  0xe3   :  { %33 = vmax.xlane.f32.xlu0 %v32_v12 }
 0x16c   :  { %v126_v13 = vpop.xlane.xlu0 %125 }
 0x16d   :  { %v127_v14 = vsub.f32 %v110_v6, %v126_v13 }
 0x16f   :  { %v128_v15 = vmul.f32 14.285714, %v127_v14 }
 0x170   :  { %v34_v16 = vpop.xlane.xlu0 %33 }
 0x171   :  { %v129_v17 = vmul.f32 1.442695, %v128_v15  ;;  %v35_v18 = vsub.f32 %v30_v7, %v34_v16 }
 0x173   :  { %226 = vpow2.f32 %v129_v17  ;;  %v36_v19 = vmul.f32 1.442695, %v35_v18 }
 0x175   :  { %228 = vpow2.f32 %v36_v19 }
 0x17d   :  { %v227_v25 = vpop.eup %226 }
 0x17e   :  { %v131_v26 = vsel %vm122_vm4, %v227_v25, 0.0 }
 0x17f   :  { %v229_v27 = vpop.eup %228  ;;  %v132_v28 = vsel %vm123_vm2, %v131_v26, 0.0  ;;  %v135_v29 = vsel %vm121_vm5, %v131_v26, 0.0 }
 0x180   :  { %133 = vadd.xlane.f32.xlu1 %v132_v28  ;;  %v136_v30 = vsel %vm123_vm2, %v135_v29, 0.0  ;;  %v38_v31 = vsel %vm31_vm3, %v229_v27, 0.0 }
 0x181   :  { %137 = vadd.xlane.f32.xlu0 %v136_v30 }
 0x185   :  { %39 = vadd.xlane.f32.xlu0 %v38_v31 }
 0x189   :  { %52 = vadd.xlane.f32.xlu0 %v51_v33 }
 0x18d   :  { %149 = vadd.xlane.f32.xlu0 %v148_v35 }
 0x20d   :  { %v134_v36 = vpop.xlane.xlu1 %133 }
 0x20e   :  { %v139_v37 = vadd.f32 1e-08, %v134_v36  ;;  %v138_v38 = vpop.xlane.xlu0 %137 }
 0x210   :  { %230 = vrcp.f32 %v139_v37 }
 0x212   :  { %v40_v39 = vpop.xlane.xlu0 %39 }
 0x213   :  { %232 = vlog2.f32 %v40_v39 }
 0x216   :  { %v53_v46 = vpop.xlane.xlu0 %52 }
 0x21a   :  { %v231_v40 = vpop.eup %230  ;;  %v150_v50 = vpop.xlane.xlu0 %149 }
 0x21b   :  { %v141_v41 = vmul.f32 %v231_v40, %v138_v38  ;;  %vm151_vm8 = vcmp.gt.f32.partialorder %v150_v50, 1.5 }
 0x21c   :  { %v164_v55 = vsel %vm151_vm8, 1.0, %v260_v1 }
 0x21d   :  { %v233_v42 = vpop.eup %232  ;;  %v142_v43 = vadd.f32 1e-08, %v141_v41  ;;  %v165_v56 = vsel %vm56_vm7, %v164_v55, 0.0 }
 0x21e   :  { %v42_v44 = vmul.f32 0.6931472, %v233_v42 }
 0x21f   :  { %234 = vlog2.f32 %v142_v43 }
 0x220   :  { %v43_v45 = vadd.f32 %v42_v44, %v34_v16 }
 0x222   :  { %v54_v47 = vsub.f32 %v43_v45, %v53_v46 }
 0x224   :  { %v57_v48 = vsel %vm56_vm7, %v54_v47, 0.0 }
 0x225   :  { %58 = vadd.xlane.f32.xlu0 %v57_v48 }
 0x229   :  { %v235_v49 = vpop.eup %234 }
 0x22a   :  { %v144_v51 = vmul.f32 0.6931472, %v235_v49 }
 0x22c   :  { %v145_v52 = vsub.f32 0.0, %v144_v51 }
 0x22e   :  { %v153_v53 = vsel %vm151_vm8, %v145_v52, 0.0 }
 0x22f   :  { %v154_v54 = vsel %vm56_vm7, %v153_v53, 0.0 }
 0x230   :  { %155 = vadd.xlane.f32.xlu0 %v154_v54 }
 0x234   :  { %166 = vadd.xlane.f32.xlu0 %v165_v56 }
 0x2b2   :  { %v59_v57 = vpop.xlane.xlu0 %58 }
 0x2b3   :  { %v60_v58 = vrot.slane %v59_v57, 4 }
 0x2b5   :  { %v61_v59 = vadd.f32 %v60_v58, %v59_v57 }
 0x2b7   :  { %v62_v60 = vrot.slane %v61_v59, 2 }
 0x2b9   :  { %v63_v61 = vadd.f32 %v62_v60, %v61_v59 }
 0x2bb   :  { %v64_v62 = vrot.slane %v63_v61, 1 }
 0x2bd   :  { %v156_v63 = vpop.xlane.xlu0 %155  ;;  %v65_v0 = vadd.f32 %v64_v62, %v63_v61 }
 0x2be   :  { %v157_v2 = vrot.slane %v156_v63, 4 }
 0x2bf   :  { %214 = vpush %v65_v0 }
 0x2c0   :  { %v158_v3 = vadd.f32 %v157_v2, %v156_v63 }
 0x2c1   :  { %v167_v4 = vpop.xlane.xlu0 %166 }
 0x2c2   :  { %v159_v5 = vrot.slane %v158_v3, 2  ;;  %v168_v6 = vrot.slane %v167_v4, 4 }
 0x2c4   :  { %v169_v7 = vadd.f32 %v168_v6, %v167_v4  ;;  %v160_v8 = vadd.f32 %v159_v5, %v158_v3 }
 0x2c6   :  { %v170_v9 = vrot.slane %v169_v7, 2  ;;  %v161_v1 = vrot.slane %v160_v8, 1 }
 0x2c8   :  { %v171_v10 = vadd.f32 %v170_v9, %v169_v7  ;;  %v162_v11 = vadd.f32 %v161_v1, %v160_v8 }
 0x2ca   :  { %216 = vpush %v162_v11  ;;  %v172_v12 = vrot.slane %v171_v10, 1 }
 0x2cc   :  { %v173_v13 = vadd.f32 %v172_v12, %v171_v10 }
 0x2ce   :  { %218 = vpush %v173_v13 }
 0x2f0   :  { %s215_s3 = spop %214 }
 0x2f1   :  { %v178_v14 = vstv %s215_s3 }
 0x2f2   :  { %v179_v16 = vsel %vm177_vm13, %v178_v14, 0.0 }
 0x2fb   :  { %s217_s4 = spop %216 }
 0x2fc   :  { %v182_v15 = vstv %s217_s4 }
 0x2fd   :  { %v183_v17 = vsel %vm181_vm14, %v182_v15, %v179_v16 }
 0x2ff   :  { %s219_s27 = spop %218 }
 0x300   :  { %v186_v18 = vstv %s219_s27 }
 0x301   :  { %v187_v19 = vsel %vm185_vm15, %v186_v18, %v183_v17 }
 0x302   :  { %188 = vst [vmem:[#allocation2] sm:$0xff] %v187_v19 }
 0x303   :  { %247 = shalt.err (!%p244_p4)
}
 0x304   :  { %s248_s6 = scalar_lea.hbm %s348_s5, 128 }
 0x305   :  { %p249_p5 = scmp.ne.s32.totalorder %s348_s5, %s248_s6  ;;  %p252_p6 = scmp.lt.u32.totalorder %s248_s6, %s348_s5 }
 0x307   :  { %p254_p7 = pnand %p252_p6, %p249_p5 }
 0x309   :  { %257 = shalt.err (!%p254_p7)
}
 0x30a   :  { %198 = dma.vmem_to_hbm [thread:$0]  %s196_s26, 128, %s348_s5, [#allocation3]  }
 0x30b   :  { %258 = dma.done.wait [#allocation3], 128  }
 0x30c   :  { %259 = vsyncadd [#allocation3], 4294967168 }
 0x30d   :  { %202 = vsyncpa [#allocation3], 1 }

</bundles_post_ra>
